<compile_context>
chip_gen: v6e
topology: v6e:2x2x1
jax: 0.10.0
libtpu: 0.0.40
codegen_flags: <defaults>
</compile_context>

<pallas_src>
import jax
import jax.numpy as jnp
from jax.experimental import pallas as pl
from jax.experimental.pallas import tpu as pltpu


def _round_up(n, m):
    return ((n + m - 1) // m) * m


def _mlp_kernel(x_ref, w1_ref, b1_ref, w2_ref, b2_ref,
                w3_ref, b3_ref, w4t_ref, b4_ref, o_ref):
    # x_ref : (nx, TB) f32, batch on lanes
    # w1_ref: (nl, nx) f32, w2/w3: (nl, nl) f32, w4t_ref: (nl, 1) f32
    # b1..b3: (nl, 1) f32 columns, b4_ref: (1,) f32 in SMEM
    # o_ref : (1, TB) f32, lane-dense output slab
    nx = x_ref.shape[0]

    # Layer 1 on the VPU: K = nx = 2 would waste a full MXU push/drain
    # (2 of 128/256 systolic rows used).  Lane-broadcast each weight column,
    # sublane-broadcast each input-feature row, FMA.
    h = w1_ref[:, 0:1] * x_ref[0:1, :]                      # (nl, TB)
    for k in range(1, nx):                                  # unrolled (nx static)
        h = h + w1_ref[:, k:k + 1] * x_ref[k:k + 1, :]
    h = jnp.maximum(h + b1_ref[...], 0.0)

    # Layers 2/3 on the MXU, f32 accumulation (parity with the f32 torch model).
    h = jnp.dot(w2_ref[...], h, preferred_element_type=jnp.float32)
    h = jnp.maximum(h + b2_ref[...], 0.0)
    h = jnp.dot(w3_ref[...], h, preferred_element_type=jnp.float32)
    h = jnp.maximum(h + b3_ref[...], 0.0)

    # Layer 4 as a sublane (XLU) reduction: M = 1 would waste another MXU pass.
    out = jnp.sum(w4t_ref[...] * h, axis=0, keepdims=True)  # (1, TB)
    o_ref[...] = (out + b4_ref[0]).astype(o_ref.dtype)


def d_mlp_forward(x, params, *, tb_cap=8192):
    """x: (B, nx) float32. params: torch-style (out,in) weights / (out,) biases.
    Returns out.squeeze() -> (B,) float32 (scalar if B == 1, like torch)."""
    B, nx = x.shape
    nl = params["w1"].shape[0]

    # Large lane tiles amortize the ~0.35us/step grid overhead and DMA fixed
    # cost, but aim for >= 2 grid steps when B permits so the "parallel" axis
    # can shard across v7x's two TensorCores.
    TB = max(128, min(tb_cap, _round_up((B + 1) // 2, 128)))
    Bp = _round_up(B, TB)

    # Batch-on-lanes layout: only a tiny (nx, B) transpose + ragged-tile pad
    # (no full zero-filled / dtype-cast copy of x).  Padded lanes become junk
    # after bias+ReLU but are never reduced over the lane axis; sliced off below.
    x_t = x.astype(jnp.float32).T                            # (nx, B)
    if Bp != B:
        x_t = jnp.pad(x_t, ((0, 0), (0, Bp - B)))

    w1 = params["w1"].astype(jnp.float32)                    # (nl, nx)
    w2 = params["w2"].astype(jnp.float32)                    # (nl, nl)
    w3 = params["w3"].astype(jnp.float32)                    # (nl, nl)
    w4t = params["w4"].astype(jnp.float32).T                 # (nl, 1)
    b1 = params["b1"].reshape(nl, 1).astype(jnp.float32)
    b2 = params["b2"].reshape(nl, 1).astype(jnp.float32)
    b3 = params["b3"].reshape(nl, 1).astype(jnp.float32)
    b4 = params["b4"].reshape(1).astype(jnp.float32)         # 1-D SMEM scalar

    const = lambda shape: pl.BlockSpec(shape, lambda i: (0, 0))  # VMEM-resident

    out = pl.pallas_call(
        _mlp_kernel,
        out_shape=jax.ShapeDtypeStruct((1, Bp), jnp.float32),
        grid=(Bp // TB,),
        in_specs=[
            pl.BlockSpec((nx, TB), lambda i: (0, i)),        # streamed x tiles
            const((nl, nx)), const((nl, 1)),
            const((nl, nl)), const((nl, 1)),
            const((nl, nl)), const((nl, 1)),
            const((nl, 1)),                                  # w4^T column
            pl.BlockSpec(memory_space=pltpu.MemorySpace.SMEM),  # b4 scalar
        ],
        out_specs=pl.BlockSpec((1, TB), lambda i: (0, i)),   # lane-dense store
        compiler_params=pltpu.CompilerParams(
            dimension_semantics=("parallel",),               # megacore on v7x
        ),
    )(x_t, w1, b1, w2, b2, w3, b3, w4t, b4)

    # torch: out.squeeze()
    return jnp.squeeze(out[:, :B])


def init_params(key, nx, nl):
    """nn.Linear-style init: W ~ U(-1/sqrt(fan_in), 1/sqrt(fan_in)), shape (out, in)."""
    ks = jax.random.split(key, 8)

    def lin(kw, kb, fan_in, fan_out):
        bound = 1.0 / jnp.sqrt(jnp.float32(fan_in))
        w = jax.random.uniform(kw, (fan_out, fan_in), jnp.float32, -bound, bound)
        b = jax.random.uniform(kb, (fan_out,), jnp.float32, -bound, bound)
        return w, b

    w1, b1 = lin(ks[0], ks[1], nx, nl)
    w2, b2 = lin(ks[2], ks[3], nl, nl)
    w3, b3 = lin(ks[4], ks[5], nl, nl)
    w4, b4 = lin(ks[6], ks[7], nl, 1)
    return dict(w1=w1, b1=b1, w2=w2, b2=b2, w3=w3, b3=b3, w4=w4, b4=b4)


def _reference(x, p):
    """Pure-JAX f32 reference matching the torch f32 forward."""
    h = jnp.maximum(x @ p["w1"].T + p["b1"], 0.0)
    h = jnp.maximum(h @ p["w2"].T + p["b2"], 0.0)
    h = jnp.maximum(h @ p["w3"].T + p["b3"], 0.0)
    return jnp.squeeze(h @ p["w4"].T + p["b4"])


if __name__ == "__main__":
    nx = 2      # as in the script: nx = 2
    nl = 32     # hidden width (opt.nl); small synthetic choice
    B = 8       # batch of 2-D points

    key = jax.random.PRNGKey(0)
    k_x, k_p, k_x2 = jax.random.split(key, 3)
    x = jax.random.normal(k_x, (B, nx), dtype=jnp.float32)
    params = init_params(k_p, nx, nl)

    out = jax.block_until_ready(d_mlp_forward(x, params))
    ref = _reference(x, params)
    assert out.shape == (B,), out.shape
    # f32 end-to-end: the only divergence source left is MXU f32 pass decomposition.
    assert jnp.allclose(out, ref, atol=5e-3, rtol=5e-3), (out, ref)

    # Exercise a ragged last tile + a 2-step grid (padding / megacore path).
    B2 = 300
    x2 = jax.random.normal(k_x2, (B2, nx), dtype=jnp.float32)
    out2 = jax.block_until_ready(d_mlp_forward(x2, params))
    ref2 = _reference(x2, params)
    assert out2.shape == (B2,), out2.shape
    assert jnp.allclose(out2, ref2, atol=5e-3, rtol=5e-3), (out2, ref2)

    print("KERNEL_OK")
</pallas_src>

<mosaic_0001>
module attributes {stable_mosaic.version = 11 : i64} {
  func.func @_mlp_kernel(%arg0: i32, %arg1: memref<2x128xf32, #tpu.memory_space<vmem>>, %arg2: memref<32x2xf32, #tpu.memory_space<vmem>>, %arg3: memref<32x1xf32, #tpu.memory_space<vmem>>, %arg4: memref<32x32xf32, #tpu.memory_space<vmem>>, %arg5: memref<32x1xf32, #tpu.memory_space<vmem>>, %arg6: memref<32x32xf32, #tpu.memory_space<vmem>>, %arg7: memref<32x1xf32, #tpu.memory_space<vmem>>, %arg8: memref<32x1xf32, #tpu.memory_space<vmem>>, %arg9: memref<1xf32, #tpu.memory_space<smem>>, %arg10: memref<1x128xf32, #tpu.memory_space<vmem>>) attributes {dimension_semantics = [#tpu.dimension_semantics<parallel>], iteration_bounds = array<i64: 1>, scalar_prefetch = 0 : i64, scratch_operands = 0 : i64, tpu.core_type = #tpu.core_type<tc>, window_params = [{transform_indices = @transform_0, window_bounds = array<i64: 2, 128>}, {pipeline_mode = #tpu.pipeline_mode<synchronous>, transform_indices = @transform_1, window_bounds = array<i64: 32, 2>}, {pipeline_mode = #tpu.pipeline_mode<synchronous>, transform_indices = @transform_2, window_bounds = array<i64: 32, 1>}, {pipeline_mode = #tpu.pipeline_mode<synchronous>, transform_indices = @transform_3, window_bounds = array<i64: 32, 32>}, {pipeline_mode = #tpu.pipeline_mode<synchronous>, transform_indices = @transform_4, window_bounds = array<i64: 32, 1>}, {pipeline_mode = #tpu.pipeline_mode<synchronous>, transform_indices = @transform_5, window_bounds = array<i64: 32, 32>}, {pipeline_mode = #tpu.pipeline_mode<synchronous>, transform_indices = @transform_6, window_bounds = array<i64: 32, 1>}, {pipeline_mode = #tpu.pipeline_mode<synchronous>, transform_indices = @transform_7, window_bounds = array<i64: 32, 1>}, {transform_indices = @transform_8, window_bounds = array<i64: 1>}, {transform_indices = @transform_9, window_bounds = array<i64: 1, 128>}]} {
    %c0 = arith.constant 0 : index
    %c0_0 = arith.constant 0 : index
    %0 = vector.load %arg2[%c0, %c0_0] : memref<32x2xf32, #tpu.memory_space<vmem>>, vector<32x1xf32>
    %c0_1 = arith.constant 0 : index
    %c0_2 = arith.constant 0 : index
    %1 = vector.load %arg1[%c0_1, %c0_2] : memref<2x128xf32, #tpu.memory_space<vmem>>, vector<1x128xf32>
    %2 = vector.broadcast %0 : vector<32x1xf32> to vector<32x128xf32>
    %3 = vector.broadcast %1 : vector<1x128xf32> to vector<32x128xf32>
    %4 = arith.mulf %2, %3 : vector<32x128xf32>
    %c0_3 = arith.constant 0 : index
    %c1 = arith.constant 1 : index
    %5 = vector.load %arg2[%c0_3, %c1] : memref<32x2xf32, #tpu.memory_space<vmem>>, vector<32x1xf32>
    %c1_4 = arith.constant 1 : index
    %c0_5 = arith.constant 0 : index
    %6 = vector.load %arg1[%c1_4, %c0_5] : memref<2x128xf32, #tpu.memory_space<vmem>>, vector<1x128xf32>
    %7 = vector.broadcast %5 : vector<32x1xf32> to vector<32x128xf32>
    %8 = vector.broadcast %6 : vector<1x128xf32> to vector<32x128xf32>
    %9 = arith.mulf %7, %8 : vector<32x128xf32>
    %10 = arith.addf %4, %9 : vector<32x128xf32>
    %c0_6 = arith.constant 0 : index
    %c0_7 = arith.constant 0 : index
    %11 = vector.load %arg3[%c0_6, %c0_7] : memref<32x1xf32, #tpu.memory_space<vmem>>, vector<32x1xf32>
    %12 = vector.broadcast %11 : vector<32x1xf32> to vector<32x128xf32>
    %13 = arith.addf %10, %12 : vector<32x128xf32>
    %cst = arith.constant 0.000000e+00 : f32
    %14 = vector.broadcast %cst : f32 to vector<32x128xf32>
    %15 = arith.maximumf %13, %14 : vector<32x128xf32>
    %c0_8 = arith.constant 0 : index
    %c0_9 = arith.constant 0 : index
    %16 = vector.load %arg4[%c0_8, %c0_9] : memref<32x32xf32, #tpu.memory_space<vmem>>, vector<32x32xf32>
    %cst_10 = arith.constant dense<0.000000e+00> : vector<32x128xf32>
    %17 = tpu.matmul %16, %15, %cst_10 {dimension_numbers = #tpu.dot_dimension_numbers<[1], [0], [0], [1], [0, 0, 1, 1], [], []>} : vector<32x32xf32>, vector<32x128xf32>, vector<32x128xf32> -> vector<32x128xf32>
    %c0_11 = arith.constant 0 : index
    %c0_12 = arith.constant 0 : index
    %18 = vector.load %arg5[%c0_11, %c0_12] : memref<32x1xf32, #tpu.memory_space<vmem>>, vector<32x1xf32>
    %19 = vector.broadcast %18 : vector<32x1xf32> to vector<32x128xf32>
    %20 = arith.addf %17, %19 : vector<32x128xf32>
    %cst_13 = arith.constant 0.000000e+00 : f32
    %21 = vector.broadcast %cst_13 : f32 to vector<32x128xf32>
    %22 = arith.maximumf %20, %21 : vector<32x128xf32>
    %c0_14 = arith.constant 0 : index
    %c0_15 = arith.constant 0 : index
    %23 = vector.load %arg6[%c0_14, %c0_15] : memref<32x32xf32, #tpu.memory_space<vmem>>, vector<32x32xf32>
    %cst_16 = arith.constant dense<0.000000e+00> : vector<32x128xf32>
    %24 = tpu.matmul %23, %22, %cst_16 {dimension_numbers = #tpu.dot_dimension_numbers<[1], [0], [0], [1], [0, 0, 1, 1], [], []>} : vector<32x32xf32>, vector<32x128xf32>, vector<32x128xf32> -> vector<32x128xf32>
    %c0_17 = arith.constant 0 : index
    %c0_18 = arith.constant 0 : index
    %25 = vector.load %arg7[%c0_17, %c0_18] : memref<32x1xf32, #tpu.memory_space<vmem>>, vector<32x1xf32>
    %26 = vector.broadcast %25 : vector<32x1xf32> to vector<32x128xf32>
    %27 = arith.addf %24, %26 : vector<32x128xf32>
    %cst_19 = arith.constant 0.000000e+00 : f32
    %28 = vector.broadcast %cst_19 : f32 to vector<32x128xf32>
    %29 = arith.maximumf %27, %28 : vector<32x128xf32>
    %c0_20 = arith.constant 0 : index
    %c0_21 = arith.constant 0 : index
    %30 = vector.load %arg8[%c0_20, %c0_21] : memref<32x1xf32, #tpu.memory_space<vmem>>, vector<32x1xf32>
    %31 = vector.broadcast %30 : vector<32x1xf32> to vector<32x128xf32>
    %32 = arith.mulf %31, %29 : vector<32x128xf32>
    %cst_22 = arith.constant dense<0.000000e+00> : vector<128xf32>
    %33 = vector.multi_reduction <add>, %32, %cst_22 [0] : vector<32x128xf32> to vector<128xf32>
    %34 = vector.shape_cast %33 : vector<128xf32> to vector<1x128xf32>
    %c0_23 = arith.constant 0 : index
    %35 = memref.load %arg9[%c0_23] : memref<1xf32, #tpu.memory_space<smem>>
    %36 = vector.broadcast %35 : f32 to vector<1x128xf32>
    %37 = arith.addf %34, %36 : vector<1x128xf32>
    %c0_24 = arith.constant 0 : index
    %c0_25 = arith.constant 0 : index
    %38 = vector.load %arg10[%c0_24, %c0_25] : memref<1x128xf32, #tpu.memory_space<vmem>>, vector<1x128xf32>
    tpu.vector_store %arg10[%c0_24, %c0_25], %37 {strides = array<i32>} : memref<1x128xf32, #tpu.memory_space<vmem>>, vector<1x128xf32>,
    return
  }
  func.func @transform_0(%arg0: i32) -> (i32, i32) {
    %c0_i32 = arith.constant 0 : i32
    %c0_i32_0 = arith.constant 0 : i32
    return %c0_i32, %arg0 : i32, i32
  }
  func.func @transform_1(%arg0: i32) -> (i32, i32) {
    %c0_i32 = arith.constant 0 : i32
    %c0_i32_0 = arith.constant 0 : i32
    %c0_i32_1 = arith.constant 0 : i32
    return %c0_i32, %c0_i32_0 : i32, i32
  }
  func.func @transform_2(%arg0: i32) -> (i32, i32) {
    %c0_i32 = arith.constant 0 : i32
    %c0_i32_0 = arith.constant 0 : i32
    %c0_i32_1 = arith.constant 0 : i32
    return %c0_i32, %c0_i32_0 : i32, i32
  }
  func.func @transform_3(%arg0: i32) -> (i32, i32) {
    %c0_i32 = arith.constant 0 : i32
    %c0_i32_0 = arith.constant 0 : i32
    %c0_i32_1 = arith.constant 0 : i32
    return %c0_i32, %c0_i32_0 : i32, i32
  }
  func.func @transform_4(%arg0: i32) -> (i32, i32) {
    %c0_i32 = arith.constant 0 : i32
    %c0_i32_0 = arith.constant 0 : i32
    %c0_i32_1 = arith.constant 0 : i32
    return %c0_i32, %c0_i32_0 : i32, i32
  }
  func.func @transform_5(%arg0: i32) -> (i32, i32) {
    %c0_i32 = arith.constant 0 : i32
    %c0_i32_0 = arith.constant 0 : i32
    %c0_i32_1 = arith.constant 0 : i32
    return %c0_i32, %c0_i32_0 : i32, i32
  }
  func.func @transform_6(%arg0: i32) -> (i32, i32) {
    %c0_i32 = arith.constant 0 : i32
    %c0_i32_0 = arith.constant 0 : i32
    %c0_i32_1 = arith.constant 0 : i32
    return %c0_i32, %c0_i32_0 : i32, i32
  }
  func.func @transform_7(%arg0: i32) -> (i32, i32) {
    %c0_i32 = arith.constant 0 : i32
    %c0_i32_0 = arith.constant 0 : i32
    %c0_i32_1 = arith.constant 0 : i32
    return %c0_i32, %c0_i32_0 : i32, i32
  }
  func.func @transform_8(%arg0: i32) -> i32 {
    %c0_i32 = arith.constant 0 : i32
    %c0_i32_0 = arith.constant 0 : i32
    return %c0_i32 : i32
  }
  func.func @transform_9(%arg0: i32) -> (i32, i32) {
    %c0_i32 = arith.constant 0 : i32
    %c0_i32_0 = arith.constant 0 : i32
    return %c0_i32, %arg0 : i32, i32
  }
}

</mosaic_0001>

<bundles_post_ra>
// kernel: tpu_custom_call.1
= control target key start
LH: loop header
LB: loop body
LE: loop exit
PB: predicated region body
PF: predicated region fallthrough
CT: control target
= control target key end

     0   :  { %v528_v2 = vmov 1   ;;  %v529_v3 = vmov 0   ;;  %s685_s0 = inlined_call_operand.vmem [shape: f32[2,128], index: 0, kind: input, shape index: {}]   ;;  %s686_s1 = inlined_call_operand.vmem [shape: f32[32,2], index: 1, kind: input, shape index: {}]   ;;  %s687_s2 = inlined_call_operand.vmem [shape: f32[32,1], index: 2, kind: input, shape index: {}]   ;;  %s688_s3 = inlined_call_operand.vmem [shape: f32[32,32], index: 3, kind: input, shape index: {}]   ;;  %s689_s4 = inlined_call_operand.vmem [shape: f32[32,1], index: 4, kind: input, shape index: {}]   ;;  %s690_s5 = inlined_call_operand.vmem [shape: f32[32,32], index: 5, kind: input, shape index: {}]   ;;  %s691_s6 = inlined_call_operand.vmem [shape: f32[32,1], index: 6, kind: input, shape index: {}]   ;;  %s692_s7 = inlined_call_operand.vmem [shape: f32[32,1], index: 7, kind: input, shape index: {}]   ;;  %s693_s8 = inlined_call_operand.<no memory space> [shape: f32[1], index: 8, kind: input, shape index: {}]   ;;  %s694_s9 = inlined_call_operand.hbm [shape: f32[1,128], index: 9, kind: output, shape index: {}]  }
   0x1   :  { %v37_v0 = vld [vmem:[%s686_s1 + $0x18] sm:$0xff]  ;;  %v36_v1 = vld [vmem:[%s686_s1 + $0x10] sm:$0xff]  ;;  %499 = vset.pattern.permute.xlu0 %v528_v2  ;;  %500 = vset.pattern.permute.xlu1 %v529_v3  ;;  %v35_v4 = vld [vmem:[%s686_s1 + $0x8] sm:$0xff] }
   0x2   :  { %81 = vperm.xlu0 %499, %v37_v0   ;;  %51 = vperm.xlu1 %500, %v36_v1  }
   0x6   :  { %501 = vset.pattern.permute.xlu1 %v528_v2  ;;  %73 = vperm.xlu0 %499, %v35_v4  }
   0x7   :  { %77 = vperm.xlu1 %501, %v36_v1  }
   0x8   :  { %15 = vsyncpa [#allocation4], 0  ;;  %v34_v5 = vld [vmem:[%s686_s1] sm:$0xff]  ;;  %v99_v6 = vld [vmem:[%s687_s2 + $0x18] sm:$0xff]  ;;  %vm156_vm0 = vcmask 261120   ;;  %s530_s19 = smov [#allocation3]  }
   0x9   :  { %v97_v7 = vld [vmem:[%s687_s2 + $0x8] sm:$0xff]  ;;  %v135_v8 = vld [vmem:[%s689_s4 + $0x18] sm:$0xff]  ;;  %v98_v9 = vld [vmem:[%s687_s2 + $0x10] sm:$0xff]  ;;  %s434_s20 = sshll.u32 %s530_s19, 4  ;;  %s435_s20 = int_to_ptr.vmem [resolvable:$true] %s434_s20 }
   0xa   :  { %503 = vset.pattern.permute.xlu0 %v529_v3  ;;  %v133_v10 = vld [vmem:[%s689_s4 + $0x8] sm:$0xff]  ;;  %v96_v11 = vld [vmem:[%s687_s2] sm:$0xff]  ;;  %v134_v14 = vld [vmem:[%s689_s4 + $0x10] sm:$0xff]  ;;  %s506_s21 = scalar_lea.vmem %s435_s20, 16  ;;  %s510_s22 = scalar_lea.vmem %s435_s20, 32 }
   0xb   :  { %502 = vset.pattern.permute.xlu1 %v529_v3  ;;  %56 = vperm.xlu0 %503, %v37_v0   ;;  %v262_v12 = vld [vmem:[%s691_s6] sm:$0xff]  ;;  %v264_v15 = vld [vmem:[%s691_s6 + $0x10] sm:$0xff]  ;;  %v263_v18 = vld [vmem:[%s691_s6 + $0x8] sm:$0xff]  ;;  %p507_p0 = scmp.ne.s32.totalorder %s435_s20, %s506_s21  ;;  %p511_p1 = scmp.lt.s32.totalorder %s435_s20, %s435_s20 }
   0xc   :  { %46 = vperm.xlu1 %502, %v35_v4   ;;  %v128_v13 = vld [vmem:[%s688_s3] sm:$0xff]  ;;  %v389_v19 = vld [vmem:[%s692_s7 + $0x10] sm:$0xff]  ;;  %v265_v20 = vld [vmem:[%s691_s6 + $0x18] sm:$0xff]  ;;  %p512_p2 = scmp.lt.s32.totalorder %s510_s22, %s506_s21 }
   0xd   :  { %476 = vmatprep.mubr.msk.f32.mxu0 %vm156_vm0, %v128_v13  ;;  %v132_v16 = vld [vmem:[%s689_s4] sm:$0xff]  ;;  %v388_v21 = vld [vmem:[%s692_s7 + $0x8] sm:$0xff]  ;;  %v390_v22 = vld [vmem:[%s692_s7 + $0x18] sm:$0xff] }
   0xe   :  { %v387_v17 = vld [vmem:[%s692_s7] sm:$0xff]  ;;  %v129_v57 = vld [vmem:[%s688_s3 + $0x8] sm:$0xff]  ;;  %v130_v58 = vld [vmem:[%s688_s3 + $0x10] sm:$0xff]  ;;  %p513_p3 = por %p512_p2, %p511_p1 }
   0xf   :  { %41 = vperm.xlu0 %503, %v34_v5   ;;  %v443_v27 = vld [vmem:[%s685_s0 + $0x1] ss:$0 sm:$0xff]  ;;  %v442_v29 = vld [vmem:[%s685_s0] ss:$0 sm:$0xff]  ;;  %v131_v59 = vld [vmem:[%s688_s3 + $0x18] sm:$0xff] }
  0x10   :  { %117 = vperm.xlu1 %502, %v99_v6   ;;  %v258_v60 = vld [vmem:[%s690_s5] sm:$0xff]  ;;  %v259_v13 = vld [vmem:[%s690_s5 + $0x8] sm:$0xff]  ;;  %p514_p4 = pnand %p513_p3, %p507_p0 }
  0x11   :  { %490 = vmatprep.mubr.msk.f32.mxu1 %vm156_vm0, %v258_v60 }
  0x13   :  { %107 = vperm.xlu0 %503, %v97_v7  }
  0x14   :  { %504 = vset.pattern.permute.xlu1 %v528_v2 }
  0x15   :  { %69 = vperm.xlu1 %504, %v34_v5  }
  0x17   :  { %153 = vperm.xlu0 %503, %v135_v8  }
  0x19   :  { %505 = vset.pattern.permute.xlu1 %v529_v3 }
  0x1a   :  { %112 = vperm.xlu1 %505, %v98_v9  }
  0x1b   :  { %143 = vperm.xlu0 %503, %v133_v10  }
  0x1e   :  { %102 = vperm.xlu1 %505, %v96_v11  }
  0x1f   :  { %268 = vperm.xlu0 %503, %v262_v12  }
  0x22   :  { %148 = vperm.xlu1 %505, %v134_v14   ;;  %v260_v14 = vld [vmem:[%s690_s5 + $0x10] sm:$0xff] }
  0x23   :  { %278 = vperm.xlu0 %503, %v264_v15   ;;  %v261_v15 = vld [vmem:[%s690_s5 + $0x18] sm:$0xff] }
  0x26   :  { %138 = vperm.xlu1 %505, %v132_v16  }
  0x27   :  { %393 = vperm.xlu0 %503, %v387_v17  }
  0x2a   :  { %273 = vperm.xlu1 %505, %v263_v18  }
  0x2b   :  { %403 = vperm.xlu0 %503, %v389_v19  }
  0x2e   :  { %283 = vperm.xlu1 %505, %v265_v20  }
  0x32   :  { %398 = vperm.xlu1 %505, %v388_v21  }
  0x36   :  { %408 = vperm.xlu1 %505, %v390_v22  }
  0x7d   :  { %v52_v23 = vpop.permute.xlu1 %51  ;;  %v82_v24 = vpop.permute.xlu0 %81 }
  0x7e   :  { %v91_v28 = vmul.f32 %v443_v27, %v82_v24  ;;  %v65_v42 = vmul.f32 %v442_v29, %v52_v23 }
  0x81   :  { %v74_v25 = vpop.permute.xlu0 %73 }
  0x82   :  { %v78_v26 = vpop.permute.xlu1 %77  ;;  %v89_v39 = vmul.f32 %v443_v27, %v74_v25 }
  0x83   :  { %v90_v38 = vmul.f32 %v443_v27, %v78_v26 }
  0x85   :  { %v94_v47 = vadd.f32 %v90_v38, %v65_v42 }
  0x86   :  { %v57_v30 = vpop.permute.xlu0 %56 }
  0x87   :  { %v66_v31 = vmul.f32 %v442_v29, %v57_v30  ;;  %v47_v32 = vpop.permute.xlu1 %46 }
  0x88   :  { %v64_v40 = vmul.f32 %v442_v29, %v47_v32 }
  0x89   :  { %v95_v33 = vadd.f32 %v91_v28, %v66_v31 }
  0x8a   :  { %v42_v36 = vpop.permute.xlu0 %41  ;;  %v93_v45 = vadd.f32 %v89_v39, %v64_v40 }
  0x8b   :  { %v118_v34 = vpop.permute.xlu1 %117  ;;  %v63_v44 = vmul.f32 %v442_v29, %v42_v36 }
  0x8c   :  { %v123_v35 = vadd.f32 %v118_v34, %v95_v33 }
  0x8e   :  { %v127_v37 = vmax.f32 %v123_v35, 0.0  ;;  %v108_v43 = vpop.permute.xlu0 %107 }
  0x8f   :  { %v121_v49 = vadd.f32 %v108_v43, %v93_v45 }
  0x90   :  { %468 = vmatprep.subr.mxu0 %v127_v37  ;;  %v70_v41 = vpop.permute.xlu1 %69 }
  0x91   :  { %469 = vmatpush3.msra.mxu0 %v127_v37  ;;  %v88_v46 = vmul.f32 %v443_v27, %v70_v41  ;;  %v125_v54 = vmax.f32 %v121_v49, 0.0 }
  0x92   :  { %v154_v61 = vpop.permute.xlu0 %153 }
  0x93   :  { %v92_v52 = vadd.f32 %v88_v46, %v63_v44 }
  0x95   :  { %v113_v48 = vpop.permute.xlu1 %112 }
  0x96   :  { %v122_v50 = vadd.f32 %v113_v48, %v94_v47  ;;  %v144_v3 = vpop.permute.xlu0 %143  ;;  %v425_v48 = vstv %s693_s8 }
  0x98   :  { %v126_v51 = vmax.f32 %v122_v50, 0.0 }
  0x99   :  { %v103_v53 = vpop.permute.xlu1 %102 }
  0x9a   :  { %v120_v55 = vadd.f32 %v103_v53, %v92_v52  ;;  %470 = vmatprep.subr.mxu0 %v126_v51  ;;  %v269_v16 = vpop.permute.xlu0 %268 }
  0x9b   :  { %471 = vmatpush3.msra.mxu0 %v126_v51 }
  0x9c   :  { %v124_v56 = vmax.f32 %v120_v55, 0.0  ;;  %472 = vmatprep.subr.mxu0 %v125_v54 }
  0x9d   :  { %473 = vmatpush3.msra.mxu0 %v125_v54  ;;  %v149_v63 = vpop.permute.xlu1 %148 }
  0x9e   :  { %474 = vmatprep.subr.mxu0 %v124_v56  ;;  %v279_v18 = vpop.permute.xlu0 %278 }
  0x9f   :  { %475 = vmatpush3.msra.mxu0 %v124_v56 }
  0xa0   :  { %477 = vmatmul.mubr.msk.f32.vlgmr.msra.gmra.mxu0 %vm156_vm0, %v129_v57 }
  0xa1   :  { %479 = vmatprep.mubr.msk.f32.mxu0 %vm156_vm0, %v130_v58  ;;  %v139_v8 = vpop.permute.xlu1 %138 }
  0xa2   :  { %v394_v24 = vpop.permute.xlu0 %393 }
  0xa4   :  { %480 = vmatmul.mubr.msk.f32.gmra.mxu0 %vm156_vm0, %v131_v59 }
  0xa5   :  { %v274_v17 = vpop.permute.xlu1 %273 }
  0xa6   :  { %v404_v36 = vpop.permute.xlu0 %403 }
  0xa9   :  { %v284_v19 = vpop.permute.xlu1 %283 }
  0xad   :  { %v399_v29 = vpop.permute.xlu1 %398 }
  0xb1   :  { %v409_v39 = vpop.permute.xlu1 %408 }
 0x160   :  { %v478_v62 = vpop.f32.mrf.mxu0 }
 0x161   :  { %v241_v5 = vadd.f32 %v478_v62, %v144_v3 }
 0x162   :  { %v235_v0 = vpop.f32.mrf.mxu0 }
 0x163   :  { %v236_v9 = vadd.f32 %v235_v0, %v139_v8  ;;  %v255_v11 = vmax.f32 %v241_v5, 0.0 }
 0x164   :  { %v481_v1 = vpop.f32.mrf.mxu0 }
 0x165   :  { %v251_v2 = vadd.f32 %v481_v1, %v154_v61  ;;  %v254_v12 = vmax.f32 %v236_v9, 0.0 }
 0x166   :  { %v245_v4 = vpop.f32.mrf.mxu0 }
 0x167   :  { %v257_v6 = vmax.f32 %v251_v2, 0.0  ;;  %v246_v7 = vadd.f32 %v245_v4, %v149_v63 }
 0x169   :  { %v256_v10 = vmax.f32 %v246_v7, 0.0  ;;  %482 = vmatprep.subr.mxu1 %v257_v6 }
 0x16a   :  { %483 = vmatpush3.msra.mxu1 %v257_v6 }
 0x16b   :  { %484 = vmatprep.subr.mxu1 %v256_v10 }
 0x16c   :  { %485 = vmatpush3.msra.mxu1 %v256_v10 }
 0x16d   :  { %486 = vmatprep.subr.mxu1 %v255_v11 }
 0x16e   :  { %487 = vmatpush3.msra.mxu1 %v255_v11 }
 0x16f   :  { %488 = vmatprep.subr.mxu1 %v254_v12 }
 0x170   :  { %489 = vmatpush3.msra.mxu1 %v254_v12 }
 0x171   :  { %491 = vmatmul.mubr.msk.f32.vlgmr.msra.gmra.mxu1 %vm156_vm0, %v259_v13 }
 0x172   :  { %493 = vmatprep.mubr.msk.f32.mxu1 %vm156_vm0, %v260_v14 }
 0x175   :  { %494 = vmatmul.mubr.msk.f32.gmra.mxu1 %vm156_vm0, %v261_v15 }
 0x231   :  { %v492_v20 = vpop.f32.mrf.mxu1 }
 0x232   :  { %v370_v21 = vadd.f32 %v492_v20, %v274_v17 }
 0x233   :  { %v364_v22 = vpop.f32.mrf.mxu1 }
 0x234   :  { %v365_v23 = vadd.f32 %v364_v22, %v269_v16  ;;  %v384_v26 = vmax.f32 %v370_v21, 0.0 }
 0x235   :  { %v495_v25 = vpop.f32.mrf.mxu1 }
 0x236   :  { %v383_v27 = vmax.f32 %v365_v23, 0.0  ;;  %v380_v28 = vadd.f32 %v495_v25, %v284_v19  ;;  %v412_v33 = vmul.f32 %v399_v29, %v384_v26 }
 0x237   :  { %v374_v30 = vpop.f32.mrf.mxu1 }
 0x238   :  { %v411_v31 = vmul.f32 %v394_v24, %v383_v27  ;;  %v375_v32 = vadd.f32 %v374_v30, %v279_v18  ;;  %v386_v34 = vmax.f32 %v380_v28, 0.0 }
 0x23a   :  { %v385_v35 = vmax.f32 %v375_v32, 0.0  ;;  %v415_v37 = vadd.f32 %v412_v33, %v411_v31  ;;  %v414_v40 = vmul.f32 %v409_v39, %v386_v34 }
 0x23c   :  { %v413_v38 = vmul.f32 %v404_v36, %v385_v35 }
 0x23e   :  { %v416_v41 = vadd.f32 %v415_v37, %v413_v38 }
 0x240   :  { %v417_v42 = vadd.f32 %v416_v41, %v414_v40 }
 0x242   :  { %v418_v43 = vrot.slane %v417_v42, 4 }
 0x244   :  { %v419_v44 = vadd.f32 %v418_v43, %v417_v42 }
 0x246   :  { %v420_v45 = vrot.slane %v419_v44, 2 }
 0x248   :  { %v421_v46 = vadd.f32 %v420_v45, %v419_v44 }
 0x24a   :  { %v422_v47 = vrot.slane %v421_v46, 1 }
 0x24c   :  { %v423_v49 = vadd.f32 %v422_v47, %v421_v46 }
 0x24e   :  { %v426_v50 = vadd.f32 %v425_v48, %v423_v49 }
 0x250   :  { %427 = vst [vmem:[#allocation3] sm:$0x1] %v426_v50 }
 0x251   :  { %517 = shalt.err (!%p514_p4)
}
 0x252   :  { %437 = dma.vmem_to_hbm [thread:$0]  %s435_s20, 16, %s694_s9, [#allocation4]  }
 0x253   :  { %526 = dma.done.wait [#allocation4], 16  }
 0x254   :  { %527 = vsyncadd [#allocation4], 4294967280 }
 0x255   :  { %441 = vsyncpa [#allocation4], 1 }

</bundles_post_ra>
